<compile_context>
chip_gen: v7x
topology: tpu7x:2x2x1
jax: 0.10.0
libtpu: 0.0.40
codegen_flags: <defaults>
</compile_context>

<pallas_src>
import math
import functools

import jax
import jax.numpy as jnp
from jax import lax
from jax.experimental import pallas as pl
from jax.experimental.pallas import tpu as pltpu

_VMEM_LIMIT = 48 * 1024 * 1024


# ----------------------------------------------------------------------------
# small helpers
# ----------------------------------------------------------------------------

def _divisor_tile(n, target):
    """Largest divisor of n that is <= target."""
    for d in range(min(n, target), 0, -1):
        if n % d == 0:
            return d
    return n


def _divisor_tile_mult8(n, target):
    """Largest divisor of n <= target that is a multiple of 8 (or n if n<=target)."""
    if n <= target:
        return n
    for d in range(target, 0, -1):
        if n % d == 0 and d % 8 == 0:
            return d
    return n


# ----------------------------------------------------------------------------
# conv 3x3 + folded BatchNorm (+ optional ReLU)
# ----------------------------------------------------------------------------

def _conv3x3_bn_kernel(xf_ref, w_ref, s_ref, b_ref, o_ref, acc_ref, *, Wp, M, relu):
    """One (batch, row-tile) step of a 3x3 'same' conv + folded BN (+ ReLU).

    xf_ref : (S, Cin) bf16   flattened zero-padded slab, S >= (TH+2)*Wp + 2
    w_ref  : (3, 3, Cin, Cout) bf16
    s_ref  : (1, Cout) f32   folded BN scale
    b_ref  : (1, Cout) f32   folded BN bias
    o_ref  : (M, Cout)       M = TH*Wp rows (W-padded layout; the two pad
                             columns per row are sliced off by the wrapper)
    acc_ref: (M, Cout) f32   VMEM accumulator
    """
    acc_ref[...] = jnp.dot(xf_ref[0:M, :], w_ref[0, 0],
                           preferred_element_type=jnp.float32)
    for dy in range(3):
        for dx in range(3):
            if dy == 0 and dx == 0:
                continue
            off = dy * Wp + dx
            acc_ref[...] += jnp.dot(xf_ref[off:off + M, :], w_ref[dy, dx],
                                    preferred_element_type=jnp.float32)
    y = acc_ref[...] * s_ref[...] + b_ref[...]
    if relu:
        y = jnp.maximum(y, 0.0)
    o_ref[...] = y.astype(o_ref.dtype)


def conv3x3_bn(x, w, scale, bias, *, relu, out_dtype=jnp.bfloat16, row_tile=8):
    """x: (B, H, W, Cin) channel-last -> (B, H, W, Cout).

    3x3, stride 1, pad 1, no bias, eval-mode BatchNorm folded into scale/bias.
    Row-tiled over H; each grid step runs 9 MXU matmuls with M = TH*(W+2).
    """
    # TODO(synk): add a K grid axis ("arbitrary") over Cin for very large
    # n_ch*img_h/4 so weight blocks stream instead of living whole in VMEM.
    B, H, W, Cin = x.shape
    Cout = w.shape[-1]
    TH = _divisor_tile(H, row_tile)
    T = H // TH
    Wp = W + 2
    S = (TH + 3) * Wp          # one spare padded row keeps all tap slices in-bounds
    M = TH * Wp

    x = x.astype(jnp.bfloat16)
    # zero pad: 1 row top, 2 rows bottom (1 halo + 1 spare), 1 col left/right.
    xp = jnp.pad(x, ((0, 0), (1, 2), (1, 1), (0, 0)))
    # overlapping row slabs (halo rows duplicated in HBM), flattened to (S, Cin)
    ridx = (jnp.arange(T) * TH)[:, None] + jnp.arange(TH + 3)[None, :]
    xf = xp[:, ridx].reshape(B, T, S, Cin)

    kern = functools.partial(_conv3x3_bn_kernel, Wp=Wp, M=M, relu=relu)
    out = pl.pallas_call(
        kern,
        out_shape=jax.ShapeDtypeStruct((B, T, M, Cout), out_dtype),
        grid=(B, T),
        in_specs=[
            pl.BlockSpec((None, None, S, Cin), lambda b, t: (b, t, 0, 0)),
            pl.BlockSpec((3, 3, Cin, Cout), lambda b, t: (0, 0, 0, 0)),
            pl.BlockSpec((1, Cout), lambda b, t: (0, 0)),
            pl.BlockSpec((1, Cout), lambda b, t: (0, 0)),
        ],
        out_specs=pl.BlockSpec((None, None, M, Cout), lambda b, t: (b, t, 0, 0)),
        scratch_shapes=[pltpu.VMEM((M, Cout), jnp.float32)],
        compiler_params=pltpu.CompilerParams(
            dimension_semantics=("parallel", "parallel"),
            vmem_limit_bytes=_VMEM_LIMIT),
    )(xf, w.astype(jnp.bfloat16),
      scale.reshape(1, Cout).astype(jnp.float32),
      bias.reshape(1, Cout).astype(jnp.float32))

    # drop the two right-pad columns of the Wp-wide layout
    out = out.reshape(B, T, TH, Wp, Cout)[:, :, :, :W, :].reshape(B, H, W, Cout)
    return out


# ----------------------------------------------------------------------------
# separable bilinear x4 upsample (align_corners=True)
# ----------------------------------------------------------------------------

def _upsample1d_matrix(n_in, n_out):
    """1D bilinear interpolation matrix, align_corners=True."""
    if n_in == 1:
        return jnp.ones((n_out, 1), jnp.float32)
    src = jnp.arange(n_out, dtype=jnp.float32) * (n_in - 1) / (n_out - 1)
    i0 = jnp.clip(jnp.floor(src).astype(jnp.int32), 0, n_in - 2)
    w1 = src - i0.astype(jnp.float32)
    A = (jax.nn.one_hot(i0, n_in, dtype=jnp.float32) * (1.0 - w1)[:, None]
         + jax.nn.one_hot(i0 + 1, n_in, dtype=jnp.float32) * w1[:, None])
    return A


def _upsample_w_kernel(a_ref, x_ref, o_ref, *, TH):
    # a_ref: (4W, W); x_ref: (TH, W, C); o_ref: (TH, 4W, C)
    a = a_ref[...]
    for r in range(TH):
        o_ref[r] = jnp.dot(a, x_ref[r],
                           preferred_element_type=jnp.float32).astype(o_ref.dtype)


def _upsample_h_kernel(a_ref, x_ref, o_ref):
    # a_ref: (TM, H); x_ref: (H, N); o_ref: (TM, N)
    o_ref[...] = jnp.dot(a_ref[...], x_ref[...],
                         preferred_element_type=jnp.float32).astype(o_ref.dtype)


def upsample_bilinear_x4(x):
    """x: (B, H, W, C) -> (B, 4H, 4W, C); UpsamplingBilinear2d(scale_factor=4)."""
    B, H, W, C = x.shape
    H4, W4 = 4 * H, 4 * W
    x = x.astype(jnp.bfloat16)
    A_w = _upsample1d_matrix(W, W4).astype(jnp.bfloat16)
    A_h = _upsample1d_matrix(H, H4).astype(jnp.bfloat16)

    # pass 1: interpolate along W.  A_w is DMA'd once (constant block index).
    TH = _divisor_tile(H, 8)
    T = H // TH
    y = pl.pallas_call(
        functools.partial(_upsample_w_kernel, TH=TH),
        out_shape=jax.ShapeDtypeStruct((B, H, W4, C), jnp.bfloat16),
        grid=(B, T),
        in_specs=[
            pl.BlockSpec((W4, W), lambda b, t: (0, 0)),
            pl.BlockSpec((None, TH, W, C), lambda b, t: (b, t, 0, 0)),
        ],
        out_specs=pl.BlockSpec((None, TH, W4, C), lambda b, t: (b, t, 0, 0)),
        compiler_params=pltpu.CompilerParams(
            dimension_semantics=("parallel", "parallel"),
            vmem_limit_bytes=_VMEM_LIMIT),
    )(A_w, x)

    # pass 2: interpolate along H as (4H, H) x (H, 4W*C) matmuls, tiled over
    # output rows; feature axis stays lane-dense.
    N = W4 * C
    y2 = y.reshape(B, H, N)
    TM = _divisor_tile_mult8(H4, 128)
    Tm = H4 // TM
    z = pl.pallas_call(
        _upsample_h_kernel,
        out_shape=jax.ShapeDtypeStruct((B, H4, N), jnp.bfloat16),
        grid=(B, Tm),
        in_specs=[
            pl.BlockSpec((TM, H), lambda b, m: (m, 0)),
            pl.BlockSpec((None, H, N), lambda b, m: (b, 0, 0)),
        ],
        out_specs=pl.BlockSpec((None, TM, N), lambda b, m: (b, m, 0)),
        compiler_params=pltpu.CompilerParams(
            dimension_semantics=("parallel", "parallel"),
            vmem_limit_bytes=_VMEM_LIMIT),
    )(A_h, y2)
    return z.reshape(B, H4, W4, C)


# ----------------------------------------------------------------------------
# pt_costvol_to_hmap: 4-tap bilinear gather (zero padding outside the grid)
# ----------------------------------------------------------------------------

def _warp_taps(cam_conf, sys_confs, H_fea, W_fea):
    """Per-batch flat neighbour indices (4, P) int32 and weights (4, P) f32.

    For each BEV cell (z, x): image column u = f*x/z + cx (fea dim0, size img_w)
                              disparity    d = f*tx/z     (fea dim1, size n_disp)
    sampled bilinearly with zero padding.
    """
    # TODO(synk): exact pt_costvol_to_hmap grid conventions (axis order /
    # normalization / border mode) come from sbevnet's external helper whose
    # source is not provided; implemented here as the pinhole IPM warp above.
    n_hmap = sys_confs['n_hmap']
    f, cx, cy, tx = cam_conf[0], cam_conf[1], cam_conf[2], cam_conf[3]
    xs = jnp.linspace(sys_confs['xmin'], sys_confs['xmax'], n_hmap)
    zs = jnp.linspace(sys_confs['zmin'], sys_confs['zmax'], n_hmap)
    Z, X = jnp.meshgrid(zs, xs, indexing='ij')   # rows: depth z, cols: lateral x
    u = (f * X / Z + cx).reshape(-1)
    v = (f * tx / Z).reshape(-1)
    u0 = jnp.floor(u)
    v0 = jnp.floor(v)
    du = u - u0
    dv = v - v0
    idx_list, w_list = [], []
    for ui, wu in ((u0, 1.0 - du), (u0 + 1.0, du)):
        for vi, wv in ((v0, 1.0 - dv), (v0 + 1.0, dv)):
            valid = (ui >= 0) & (ui <= H_fea - 1) & (vi >= 0) & (vi <= W_fea - 1)
            w = jnp.where(valid, wu * wv, 0.0)
            uic = jnp.clip(ui, 0, H_fea - 1).astype(jnp.int32)
            vic = jnp.clip(vi, 0, W_fea - 1).astype(jnp.int32)
            idx_list.append(uic * W_fea + vic)
            w_list.append(w)
    return (jnp.stack(idx_list, axis=0),
            jnp.stack(w_list, axis=0).astype(jnp.float32))


def _warp_gather_kernel(idx_ref, wt_ref, x_ref, o_ref, *, TP):
    """idx_ref/wt_ref: SMEM (B, 4, P); x_ref: (Q, C) VMEM; o_ref: (TP, C) f32."""
    b = pl.program_id(0)
    base = pl.program_id(1) * TP

    def body(p, carry):
        gp = base + p
        acc = (x_ref[pl.ds(idx_ref[b, 0, gp], 1), :].astype(jnp.float32)
               * wt_ref[b, 0, gp])
        for k in range(1, 4):
            acc = acc + (x_ref[pl.ds(idx_ref[b, k, gp], 1), :].astype(jnp.float32)
                         * wt_ref[b, k, gp])
        o_ref[pl.ds(p, 1), :] = acc
        return carry

    lax.fori_loop(0, TP, body, 0)


def costvol_to_hmap_gather(fea, idx, wt, n_hmap, *, p_tile=128):
    """fea: (B, Hf, Wf, C) -> (B, n_hmap, n_hmap, C) via 4-tap bilinear gather."""
    # TODO(synk): for very large Hf*Wf the full feature block exceeds VMEM;
    # switch to tiled/DMA-gather of the source rows instead of one VMEM block.
    B, Hf, Wf, C = fea.shape
    P = n_hmap * n_hmap
    Q = Hf * Wf
    TP = _divisor_tile_mult8(P, p_tile)
    T = P // TP
    x = fea.reshape(B, Q, C)
    kern = functools.partial(_warp_gather_kernel, TP=TP)
    out = pl.pallas_call(
        kern,
        out_shape=jax.ShapeDtypeStruct((B, P, C), jnp.float32),
        grid=(B, T),
        in_specs=[
            pl.BlockSpec(memory_space=pltpu.MemorySpace.SMEM),   # idx (B, 4, P)
            pl.BlockSpec(memory_space=pltpu.MemorySpace.SMEM),   # wt  (B, 4, P)
            pl.BlockSpec((None, Q, C), lambda b, t: (b, 0, 0)),  # feature block
        ],
        out_specs=pl.BlockSpec((None, TP, C), lambda b, t: (b, t, 0)),
        compiler_params=pltpu.CompilerParams(
            dimension_semantics=("parallel", "parallel"),
            vmem_limit_bytes=_VMEM_LIMIT),
    )(idx, wt, x)
    return out.reshape(B, n_hmap, n_hmap, C)


# ----------------------------------------------------------------------------
# parameter setup (plain JAX)
# ----------------------------------------------------------------------------

def _fold_bn(gamma, beta, mean, var, eps=1e-5):
    scale = gamma / jnp.sqrt(var + eps)
    return scale, beta - mean * scale


def _conv_bn_params(key, cin, cout):
    k1, k2, k3, k4, k5 = jax.random.split(key, 5)
    w = jax.random.normal(k1, (3, 3, cin, cout), jnp.float32) / math.sqrt(9 * cin)
    gamma = jax.random.uniform(k2, (cout,), jnp.float32, 0.5, 1.5)
    beta = 0.1 * jax.random.normal(k3, (cout,), jnp.float32)
    mean = 0.1 * jax.random.normal(k4, (cout,), jnp.float32)
    var = jax.random.uniform(k5, (cout,), jnp.float32, 0.5, 1.5)
    scale, bias = _fold_bn(gamma, beta, mean, var)
    return w, scale, bias


# ----------------------------------------------------------------------------
# module
# ----------------------------------------------------------------------------

class StereoBEVFeatsPallas:
    def __init__(self, img_h, n_ch=32, reduce_mode='concat', key=None):
        assert reduce_mode in ('concat', 'sum')
        self.reduce_mode = reduce_mode
        if key is None:
            key = jax.random.PRNGKey(0)
        k1, k2, k3, k4 = jax.random.split(key, 4)
        in_ch = (n_ch * img_h // 4) if reduce_mode == 'concat' else n_ch
        # dres4_2d_top:   convbn(in_ch,256) + ReLU + convbn(256,256)
        # dres4_2d_top_2: convbn(256,256)   + ReLU + convbn(256,256)
        self.p_top_1 = _conv_bn_params(k1, in_ch, 256)
        self.p_top_2 = _conv_bn_params(k2, 256, 256)
        self.p_top2_1 = _conv_bn_params(k3, 256, 256)
        self.p_top2_2 = _conv_bn_params(k4, 256, 256)

    def __call__(self, cost0, sys_confs, cam_confs):
        # cost0: (B, n_ch, n_disp//4, img_h//4, img_w//4)
        B, C, D, Hh, Ww = cost0.shape
        if self.reduce_mode == 'concat':
            # torch: permute(0,1,3,4,2).view(B, C*Hh, Ww, D); channel-last here.
            fea = jnp.transpose(cost0, (0, 4, 2, 1, 3)).reshape(B, Ww, D, C * Hh)
        else:  # 'sum'
            fea = jnp.transpose(jnp.sum(cost0, axis=3), (0, 3, 2, 1))
        fea = fea.astype(jnp.bfloat16)

        # dres4_2d_top
        fea = conv3x3_bn(fea, *self.p_top_1, relu=True)
        fea = conv3x3_bn(fea, *self.p_top_2, relu=False)

        # seg_up: UpsamplingBilinear2d(scale_factor=4), align_corners=True
        fea = upsample_bilinear_x4(fea)

        # dres4_2d_top_2
        fea = conv3x3_bn(fea, *self.p_top2_1, relu=True)
        fea = conv3x3_bn(fea, *self.p_top2_2, relu=False)

        # pt_costvol_to_hmap: bilinear grid-sample warp (image-x, disparity)->BEV
        Bf, Hf, Wf, Cf = fea.shape
        idx, wt = jax.vmap(
            lambda cc: _warp_taps(cc, sys_confs, Hf, Wf))(cam_confs)
        out = costvol_to_hmap_gather(fea, idx, wt, sys_confs['n_hmap'])
        return jnp.transpose(out, (0, 3, 1, 2))   # NCHW, float32


# ----------------------------------------------------------------------------
# demo
# ----------------------------------------------------------------------------

if __name__ == "__main__":
    key = jax.random.PRNGKey(0)
    k_in, k_par = jax.random.split(key, 2)

    B, n_ch = 2, 4
    img_h, img_w, n_disp = 16, 16, 16
    Hh, Ww, D = img_h // 4, img_w // 4, n_disp // 4

    cost0 = jax.random.normal(k_in, (B, n_ch, D, Hh, Ww), jnp.float32)
    cam_confs = jnp.array([[8.0, 8.0, 8.0, 0.50],    # [f, cx, cy, tx] per batch
                           [8.5, 8.0, 8.0, 0.54]], jnp.float32)
    sys_confs = dict(n_hmap=16, xmin=-4.0, xmax=4.0, zmin=1.0, zmax=8.0)

    model = StereoBEVFeatsPallas(img_h=img_h, n_ch=n_ch, reduce_mode='concat',
                                 key=k_par)
    out = model(cost0, sys_confs, cam_confs)
    out = jax.block_until_ready(out)

    assert out.shape == (B, 256, sys_confs['n_hmap'], sys_confs['n_hmap']), out.shape
    assert bool(jnp.all(jnp.isfinite(out)))
    print("KERNEL_OK")
</pallas_src>

<mosaic_0001>
module attributes {stable_mosaic.version = 11 : i64} {
  func.func @_conv3x3_bn_kernel(%arg0: i32, %arg1: i32, %arg2: memref<1x1x42x16xbf16, #tpu.memory_space<vmem>>, %arg3: memref<3x3x16x256xbf16, #tpu.memory_space<vmem>>, %arg4: memref<1x256xf32, #tpu.memory_space<vmem>>, %arg5: memref<1x256xf32, #tpu.memory_space<vmem>>, %arg6: memref<1x1x24x256xbf16, #tpu.memory_space<vmem>>, %arg7: memref<24x256xf32, #tpu.memory_space<vmem>>) attributes {dimension_semantics = [#tpu.dimension_semantics<parallel>, #tpu.dimension_semantics<parallel>], iteration_bounds = array<i64: 2, 1>, scalar_prefetch = 0 : i64, scratch_operands = 1 : i64, tpu.core_type = #tpu.core_type<tc>, window_params = [{transform_indices = @transform_0, window_bounds = array<i64: 1, 1, 42, 16>}, {pipeline_mode = #tpu.pipeline_mode<synchronous>, transform_indices = @transform_1, window_bounds = array<i64: 3, 3, 16, 256>}, {pipeline_mode = #tpu.pipeline_mode<synchronous>, transform_indices = @transform_2, window_bounds = array<i64: 1, 256>}, {pipeline_mode = #tpu.pipeline_mode<synchronous>, transform_indices = @transform_3, window_bounds = array<i64: 1, 256>}, {transform_indices = @transform_4, window_bounds = array<i64: 1, 1, 24, 256>}]} {
    %c0 = arith.constant 0 : index
    %c0_0 = arith.constant 0 : index
    %c0_1 = arith.constant 0 : index
    %c0_2 = arith.constant 0 : index
    %0 = vector.load %arg2[%c0, %c0_0, %c0_1, %c0_2] : memref<1x1x42x16xbf16, #tpu.memory_space<vmem>>, vector<1x1x24x16xbf16>
    %1 = vector.shape_cast %0 : vector<1x1x24x16xbf16> to vector<24x16xbf16>
    %c0_3 = arith.constant 0 : index
    %c0_4 = arith.constant 0 : index
    %c0_5 = arith.constant 0 : index
    %c0_6 = arith.constant 0 : index
    %2 = vector.load %arg3[%c0_3, %c0_4, %c0_5, %c0_6] : memref<3x3x16x256xbf16, #tpu.memory_space<vmem>>, vector<1x1x16x256xbf16>
    %3 = vector.shape_cast %2 : vector<1x1x16x256xbf16> to vector<16x256xbf16>
    %cst = arith.constant dense<0.000000e+00> : vector<24x256xf32>
    %4 = tpu.matmul %1, %3, %cst {dimension_numbers = #tpu.dot_dimension_numbers<[1], [0], [0], [1], [0, 0, 1, 1], [], []>} : vector<24x16xbf16>, vector<16x256xbf16>, vector<24x256xf32> -> vector<24x256xf32>
    %c0_7 = arith.constant 0 : index
    %c0_8 = arith.constant 0 : index
    %5 = vector.load %arg7[%c0_7, %c0_8] : memref<24x256xf32, #tpu.memory_space<vmem>>, vector<24x256xf32>
    tpu.vector_store %arg7[%c0_7, %c0_8], %4 {strides = array<i32>} : memref<24x256xf32, #tpu.memory_space<vmem>>, vector<24x256xf32>,
    %c0_9 = arith.constant 0 : index
    %c0_10 = arith.constant 0 : index
    %6 = vector.load %arg7[%c0_9, %c0_10] : memref<24x256xf32, #tpu.memory_space<vmem>>, vector<24x256xf32>
    %c0_11 = arith.constant 0 : index
    %c0_12 = arith.constant 0 : index
    %c1 = arith.constant 1 : index
    %c0_13 = arith.constant 0 : index
    %7 = vector.load %arg2[%c0_11, %c0_12, %c1, %c0_13] : memref<1x1x42x16xbf16, #tpu.memory_space<vmem>>, vector<1x1x24x16xbf16>
    %8 = vector.shape_cast %7 : vector<1x1x24x16xbf16> to vector<24x16xbf16>
    %c0_14 = arith.constant 0 : index
    %c1_15 = arith.constant 1 : index
    %c0_16 = arith.constant 0 : index
    %c0_17 = arith.constant 0 : index
    %9 = vector.load %arg3[%c0_14, %c1_15, %c0_16, %c0_17] : memref<3x3x16x256xbf16, #tpu.memory_space<vmem>>, vector<1x1x16x256xbf16>
    %10 = vector.shape_cast %9 : vector<1x1x16x256xbf16> to vector<16x256xbf16>
    %cst_18 = arith.constant dense<0.000000e+00> : vector<24x256xf32>
    %11 = tpu.matmul %8, %10, %cst_18 {dimension_numbers = #tpu.dot_dimension_numbers<[1], [0], [0], [1], [0, 0, 1, 1], [], []>} : vector<24x16xbf16>, vector<16x256xbf16>, vector<24x256xf32> -> vector<24x256xf32>
    %12 = arith.addf %6, %11 : vector<24x256xf32>
    %c0_19 = arith.constant 0 : index
    %c0_20 = arith.constant 0 : index
    %13 = vector.load %arg7[%c0_19, %c0_20] : memref<24x256xf32, #tpu.memory_space<vmem>>, vector<24x256xf32>
    tpu.vector_store %arg7[%c0_19, %c0_20], %12 {strides = array<i32>} : memref<24x256xf32, #tpu.memory_space<vmem>>, vector<24x256xf32>,
    %c0_21 = arith.constant 0 : index
    %c0_22 = arith.constant 0 : index
    %14 = vector.load %arg7[%c0_21, %c0_22] : memref<24x256xf32, #tpu.memory_space<vmem>>, vector<24x256xf32>
    %c0_23 = arith.constant 0 : index
    %c0_24 = arith.constant 0 : index
    %c2 = arith.constant 2 : index
    %c0_25 = arith.constant 0 : index
    %15 = vector.load %arg2[%c0_23, %c0_24, %c2, %c0_25] : memref<1x1x42x16xbf16, #tpu.memory_space<vmem>>, vector<1x1x24x16xbf16>
    %16 = vector.shape_cast %15 : vector<1x1x24x16xbf16> to vector<24x16xbf16>
    %c0_26 = arith.constant 0 : index
    %c2_27 = arith.constant 2 : index
    %c0_28 = arith.constant 0 : index
    %c0_29 = arith.constant 0 : index
    %17 = vector.load %arg3[%c0_26, %c2_27, %c0_28, %c0_29] : memref<3x3x16x256xbf16, #tpu.memory_space<vmem>>, vector<1x1x16x256xbf16>
    %18 = vector.shape_cast %17 : vector<1x1x16x256xbf16> to vector<16x256xbf16>
    %cst_30 = arith.constant dense<0.000000e+00> : vector<24x256xf32>
    %19 = tpu.matmul %16, %18, %cst_30 {dimension_numbers = #tpu.dot_dimension_numbers<[1], [0], [0], [1], [0, 0, 1, 1], [], []>} : vector<24x16xbf16>, vector<16x256xbf16>, vector<24x256xf32> -> vector<24x256xf32>
    %20 = arith.addf %14, %19 : vector<24x256xf32>
    %c0_31 = arith.constant 0 : index
    %c0_32 = arith.constant 0 : index
    %21 = vector.load %arg7[%c0_31, %c0_32] : memref<24x256xf32, #tpu.memory_space<vmem>>, vector<24x256xf32>
    tpu.vector_store %arg7[%c0_31, %c0_32], %20 {strides = array<i32>} : memref<24x256xf32, #tpu.memory_space<vmem>>, vector<24x256xf32>,
    %c0_33 = arith.constant 0 : index
    %c0_34 = arith.constant 0 : index
    %22 = vector.load %arg7[%c0_33, %c0_34] : memref<24x256xf32, #tpu.memory_space<vmem>>, vector<24x256xf32>
    %c0_35 = arith.constant 0 : index
    %c0_36 = arith.constant 0 : index
    %c6 = arith.constant 6 : index
    %c0_37 = arith.constant 0 : index
    %23 = vector.load %arg2[%c0_35, %c0_36, %c6, %c0_37] : memref<1x1x42x16xbf16, #tpu.memory_space<vmem>>, vector<1x1x24x16xbf16>
    %24 = vector.shape_cast %23 : vector<1x1x24x16xbf16> to vector<24x16xbf16>
    %c1_38 = arith.constant 1 : index
    %c0_39 = arith.constant 0 : index
    %c0_40 = arith.constant 0 : index
    %c0_41 = arith.constant 0 : index
    %25 = vector.load %arg3[%c1_38, %c0_39, %c0_40, %c0_41] : memref<3x3x16x256xbf16, #tpu.memory_space<vmem>>, vector<1x1x16x256xbf16>
    %26 = vector.shape_cast %25 : vector<1x1x16x256xbf16> to vector<16x256xbf16>
    %cst_42 = arith.constant dense<0.000000e+00> : vector<24x256xf32>
    %27 = tpu.matmul %24, %26, %cst_42 {dimension_numbers = #tpu.dot_dimension_numbers<[1], [0], [0], [1], [0, 0, 1, 1], [], []>} : vector<24x16xbf16>, vector<16x256xbf16>, vector<24x256xf32> -> vector<24x256xf32>
    %28 = arith.addf %22, %27 : vector<24x256xf32>
    %c0_43 = arith.constant 0 : index
    %c0_44 = arith.constant 0 : index
    %29 = vector.load %arg7[%c0_43, %c0_44] : memref<24x256xf32, #tpu.memory_space<vmem>>, vector<24x256xf32>
    tpu.vector_store %arg7[%c0_43, %c0_44], %28 {strides = array<i32>} : memref<24x256xf32, #tpu.memory_space<vmem>>, vector<24x256xf32>,
    %c0_45 = arith.constant 0 : index
    %c0_46 = arith.constant 0 : index
    %30 = vector.load %arg7[%c0_45, %c0_46] : memref<24x256xf32, #tpu.memory_space<vmem>>, vector<24x256xf32>
    %c0_47 = arith.constant 0 : index
    %c0_48 = arith.constant 0 : index
    %c7 = arith.constant 7 : index
    %c0_49 = arith.constant 0 : index
    %31 = vector.load %arg2[%c0_47, %c0_48, %c7, %c0_49] : memref<1x1x42x16xbf16, #tpu.memory_space<vmem>>, vector<1x1x24x16xbf16>
    %32 = vector.shape_cast %31 : vector<1x1x24x16xbf16> to vector<24x16xbf16>
    %c1_50 = arith.constant 1 : index
    %c1_51 = arith.constant 1 : index
    %c0_52 = arith.constant 0 : index
    %c0_53 = arith.constant 0 : index
    %33 = vector.load %arg3[%c1_50, %c1_51, %c0_52, %c0_53] : memref<3x3x16x256xbf16, #tpu.memory_space<vmem>>, vector<1x1x16x256xbf16>
    %34 = vector.shape_cast %33 : vector<1x1x16x256xbf16> to vector<16x256xbf16>
    %cst_54 = arith.constant dense<0.000000e+00> : vector<24x256xf32>
    %35 = tpu.matmul %32, %34, %cst_54 {dimension_numbers = #tpu.dot_dimension_numbers<[1], [0], [0], [1], [0, 0, 1, 1], [], []>} : vector<24x16xbf16>, vector<16x256xbf16>, vector<24x256xf32> -> vector<24x256xf32>
    %36 = arith.addf %30, %35 : vector<24x256xf32>
    %c0_55 = arith.constant 0 : index
    %c0_56 = arith.constant 0 : index
    %37 = vector.load %arg7[%c0_55, %c0_56] : memref<24x256xf32, #tpu.memory_space<vmem>>, vector<24x256xf32>
    tpu.vector_store %arg7[%c0_55, %c0_56], %36 {strides = array<i32>} : memref<24x256xf32, #tpu.memory_space<vmem>>, vector<24x256xf32>,
    %c0_57 = arith.constant 0 : index
    %c0_58 = arith.constant 0 : index
    %38 = vector.load %arg7[%c0_57, %c0_58] : memref<24x256xf32, #tpu.memory_space<vmem>>, vector<24x256xf32>
    %c0_59 = arith.constant 0 : index
    %c0_60 = arith.constant 0 : index
    %c8 = arith.constant 8 : index
    %c0_61 = arith.constant 0 : index
    %39 = vector.load %arg2[%c0_59, %c0_60, %c8, %c0_61] : memref<1x1x42x16xbf16, #tpu.memory_space<vmem>>, vector<1x1x24x16xbf16>
    %40 = vector.shape_cast %39 : vector<1x1x24x16xbf16> to vector<24x16xbf16>
    %c1_62 = arith.constant 1 : index
    %c2_63 = arith.constant 2 : index
    %c0_64 = arith.constant 0 : index
    %c0_65 = arith.constant 0 : index
    %41 = vector.load %arg3[%c1_62, %c2_63, %c0_64, %c0_65] : memref<3x3x16x256xbf16, #tpu.memory_space<vmem>>, vector<1x1x16x256xbf16>
    %42 = vector.shape_cast %41 : vector<1x1x16x256xbf16> to vector<16x256xbf16>
    %cst_66 = arith.constant dense<0.000000e+00> : vector<24x256xf32>
    %43 = tpu.matmul %40, %42, %cst_66 {dimension_numbers = #tpu.dot_dimension_numbers<[1], [0], [0], [1], [0, 0, 1, 1], [], []>} : vector<24x16xbf16>, vector<16x256xbf16>, vector<24x256xf32> -> vector<24x256xf32>
    %44 = arith.addf %38, %43 : vector<24x256xf32>
    %c0_67 = arith.constant 0 : index
    %c0_68 = arith.constant 0 : index
    %45 = vector.load %arg7[%c0_67, %c0_68] : memref<24x256xf32, #tpu.memory_space<vmem>>, vector<24x256xf32>
    tpu.vector_store %arg7[%c0_67, %c0_68], %44 {strides = array<i32>} : memref<24x256xf32, #tpu.memory_space<vmem>>, vector<24x256xf32>,
    %c0_69 = arith.constant 0 : index
    %c0_70 = arith.constant 0 : index
    %46 = vector.load %arg7[%c0_69, %c0_70] : memref<24x256xf32, #tpu.memory_space<vmem>>, vector<24x256xf32>
    %c0_71 = arith.constant 0 : index
    %c0_72 = arith.constant 0 : index
    %c12 = arith.constant 12 : index
    %c0_73 = arith.constant 0 : index
    %47 = vector.load %arg2[%c0_71, %c0_72, %c12, %c0_73] : memref<1x1x42x16xbf16, #tpu.memory_space<vmem>>, vector<1x1x24x16xbf16>
    %48 = vector.shape_cast %47 : vector<1x1x24x16xbf16> to vector<24x16xbf16>
    %c2_74 = arith.constant 2 : index
    %c0_75 = arith.constant 0 : index
    %c0_76 = arith.constant 0 : index
    %c0_77 = arith.constant 0 : index
    %49 = vector.load %arg3[%c2_74, %c0_75, %c0_76, %c0_77] : memref<3x3x16x256xbf16, #tpu.memory_space<vmem>>, vector<1x1x16x256xbf16>
    %50 = vector.shape_cast %49 : vector<1x1x16x256xbf16> to vector<16x256xbf16>
    %cst_78 = arith.constant dense<0.000000e+00> : vector<24x256xf32>
    %51 = tpu.matmul %48, %50, %cst_78 {dimension_numbers = #tpu.dot_dimension_numbers<[1], [0], [0], [1], [0, 0, 1, 1], [], []>} : vector<24x16xbf16>, vector<16x256xbf16>, vector<24x256xf32> -> vector<24x256xf32>
    %52 = arith.addf %46, %51 : vector<24x256xf32>
    %c0_79 = arith.constant 0 : index
    %c0_80 = arith.constant 0 : index
    %53 = vector.load %arg7[%c0_79, %c0_80] : memref<24x256xf32, #tpu.memory_space<vmem>>, vector<24x256xf32>
    tpu.vector_store %arg7[%c0_79, %c0_80], %52 {strides = array<i32>} : memref<24x256xf32, #tpu.memory_space<vmem>>, vector<24x256xf32>,
    %c0_81 = arith.constant 0 : index
    %c0_82 = arith.constant 0 : index
    %54 = vector.load %arg7[%c0_81, %c0_82] : memref<24x256xf32, #tpu.memory_space<vmem>>, vector<24x256xf32>
    %c0_83 = arith.constant 0 : index
    %c0_84 = arith.constant 0 : index
    %c13 = arith.constant 13 : index
    %c0_85 = arith.constant 0 : index
    %55 = vector.load %arg2[%c0_83, %c0_84, %c13, %c0_85] : memref<1x1x42x16xbf16, #tpu.memory_space<vmem>>, vector<1x1x24x16xbf16>
    %56 = vector.shape_cast %55 : vector<1x1x24x16xbf16> to vector<24x16xbf16>
    %c2_86 = arith.constant 2 : index
    %c1_87 = arith.constant 1 : index
    %c0_88 = arith.constant 0 : index
    %c0_89 = arith.constant 0 : index
    %57 = vector.load %arg3[%c2_86, %c1_87, %c0_88, %c0_89] : memref<3x3x16x256xbf16, #tpu.memory_space<vmem>>, vector<1x1x16x256xbf16>
    %58 = vector.shape_cast %57 : vector<1x1x16x256xbf16> to vector<16x256xbf16>
    %cst_90 = arith.constant dense<0.000000e+00> : vector<24x256xf32>
    %59 = tpu.matmul %56, %58, %cst_90 {dimension_numbers = #tpu.dot_dimension_numbers<[1], [0], [0], [1], [0, 0, 1, 1], [], []>} : vector<24x16xbf16>, vector<16x256xbf16>, vector<24x256xf32> -> vector<24x256xf32>
    %60 = arith.addf %54, %59 : vector<24x256xf32>
    %c0_91 = arith.constant 0 : index
    %c0_92 = arith.constant 0 : index
    %61 = vector.load %arg7[%c0_91, %c0_92] : memref<24x256xf32, #tpu.memory_space<vmem>>, vector<24x256xf32>
    tpu.vector_store %arg7[%c0_91, %c0_92], %60 {strides = array<i32>} : memref<24x256xf32, #tpu.memory_space<vmem>>, vector<24x256xf32>,
    %c0_93 = arith.constant 0 : index
    %c0_94 = arith.constant 0 : index
    %62 = vector.load %arg7[%c0_93, %c0_94] : memref<24x256xf32, #tpu.memory_space<vmem>>, vector<24x256xf32>
    %c0_95 = arith.constant 0 : index
    %c0_96 = arith.constant 0 : index
    %c14 = arith.constant 14 : index
    %c0_97 = arith.constant 0 : index
    %63 = vector.load %arg2[%c0_95, %c0_96, %c14, %c0_97] : memref<1x1x42x16xbf16, #tpu.memory_space<vmem>>, vector<1x1x24x16xbf16>
    %64 = vector.shape_cast %63 : vector<1x1x24x16xbf16> to vector<24x16xbf16>
    %c2_98 = arith.constant 2 : index
    %c2_99 = arith.constant 2 : index
    %c0_100 = arith.constant 0 : index
    %c0_101 = arith.constant 0 : index
    %65 = vector.load %arg3[%c2_98, %c2_99, %c0_100, %c0_101] : memref<3x3x16x256xbf16, #tpu.memory_space<vmem>>, vector<1x1x16x256xbf16>
    %66 = vector.shape_cast %65 : vector<1x1x16x256xbf16> to vector<16x256xbf16>
    %cst_102 = arith.constant dense<0.000000e+00> : vector<24x256xf32>
    %67 = tpu.matmul %64, %66, %cst_102 {dimension_numbers = #tpu.dot_dimension_numbers<[1], [0], [0], [1], [0, 0, 1, 1], [], []>} : vector<24x16xbf16>, vector<16x256xbf16>, vector<24x256xf32> -> vector<24x256xf32>
    %68 = arith.addf %62, %67 : vector<24x256xf32>
    %c0_103 = arith.constant 0 : index
    %c0_104 = arith.constant 0 : index
    %69 = vector.load %arg7[%c0_103, %c0_104] : memref<24x256xf32, #tpu.memory_space<vmem>>, vector<24x256xf32>
    tpu.vector_store %arg7[%c0_103, %c0_104], %68 {strides = array<i32>} : memref<24x256xf32, #tpu.memory_space<vmem>>, vector<24x256xf32>,
    %c0_105 = arith.constant 0 : index
    %c0_106 = arith.constant 0 : index
    %70 = vector.load %arg7[%c0_105, %c0_106] : memref<24x256xf32, #tpu.memory_space<vmem>>, vector<24x256xf32>
    %c0_107 = arith.constant 0 : index
    %c0_108 = arith.constant 0 : index
    %71 = vector.load %arg4[%c0_107, %c0_108] : memref<1x256xf32, #tpu.memory_space<vmem>>, vector<1x256xf32>
    %72 = vector.broadcast %71 : vector<1x256xf32> to vector<24x256xf32>
    %73 = arith.mulf %70, %72 : vector<24x256xf32>
    %c0_109 = arith.constant 0 : index
    %c0_110 = arith.constant 0 : index
    %74 = vector.load %arg5[%c0_109, %c0_110] : memref<1x256xf32, #tpu.memory_space<vmem>>, vector<1x256xf32>
    %75 = vector.broadcast %74 : vector<1x256xf32> to vector<24x256xf32>
    %76 = arith.addf %73, %75 : vector<24x256xf32>
    %cst_111 = arith.constant 0.000000e+00 : f32
    %77 = vector.broadcast %cst_111 : f32 to vector<24x256xf32>
    %78 = arith.maximumf %76, %77 : vector<24x256xf32>
    %79 = arith.truncf %78 : vector<24x256xf32> to vector<24x256xbf16>
    %c0_112 = arith.constant 0 : index
    %c0_113 = arith.constant 0 : index
    %c0_114 = arith.constant 0 : index
    %c0_115 = arith.constant 0 : index
    %80 = vector.load %arg6[%c0_112, %c0_113, %c0_114, %c0_115] : memref<1x1x24x256xbf16, #tpu.memory_space<vmem>>, vector<1x1x24x256xbf16>
    %81 = vector.shape_cast %80 : vector<1x1x24x256xbf16> to vector<24x256xbf16>
    %82 = vector.shape_cast %79 : vector<24x256xbf16> to vector<1x1x24x256xbf16>
    tpu.vector_store %arg6[%c0_112, %c0_113, %c0_114, %c0_115], %82 {strides = array<i32>} : memref<1x1x24x256xbf16, #tpu.memory_space<vmem>>, vector<1x1x24x256xbf16>,
    return
  }
  func.func @transform_0(%arg0: i32, %arg1: i32) -> (i32, i32, i32, i32) {
    %c0_i32 = arith.constant 0 : i32
    %c0_i32_0 = arith.constant 0 : i32
    %c0_i32_1 = arith.constant 0 : i32
    return %arg0, %arg1, %c0_i32, %c0_i32_0 : i32, i32, i32, i32
  }
  func.func @transform_1(%arg0: i32, %arg1: i32) -> (i32, i32, i32, i32) {
    %c0_i32 = arith.constant 0 : i32
    %c0_i32_0 = arith.constant 0 : i32
    %c0_i32_1 = arith.constant 0 : i32
    %c0_i32_2 = arith.constant 0 : i32
    %c0_i32_3 = arith.constant 0 : i32
    return %c0_i32, %c0_i32_0, %c0_i32_1, %c0_i32_2 : i32, i32, i32, i32
  }
  func.func @transform_2(%arg0: i32, %arg1: i32) -> (i32, i32) {
    %c0_i32 = arith.constant 0 : i32
    %c0_i32_0 = arith.constant 0 : i32
    %c0_i32_1 = arith.constant 0 : i32
    return %c0_i32, %c0_i32_0 : i32, i32
  }
  func.func @transform_3(%arg0: i32, %arg1: i32) -> (i32, i32) {
    %c0_i32 = arith.constant 0 : i32
    %c0_i32_0 = arith.constant 0 : i32
    %c0_i32_1 = arith.constant 0 : i32
    return %c0_i32, %c0_i32_0 : i32, i32
  }
  func.func @transform_4(%arg0: i32, %arg1: i32) -> (i32, i32, i32, i32) {
    %c0_i32 = arith.constant 0 : i32
    %c0_i32_0 = arith.constant 0 : i32
    %c0_i32_1 = arith.constant 0 : i32
    return %arg0, %arg1, %c0_i32, %c0_i32_0 : i32, i32, i32, i32
  }
}

</mosaic_0001>

<bundles_post_ra>
// kernel: tpu_custom_call.1
= control target key start
LH: loop header
LB: loop body
LE: loop exit
PB: predicated region body
PF: predicated region fallthrough
CT: control target
= control target key end

     0   :  { %9 = vsyncpa [#allocation4], 0  ;;  %s2020_s0 = inlined_call_operand.vmem [shape: bf16[2,1,42,16], index: 0, kind: input, shape index: {}]   ;;  %s2021_s1 = inlined_call_operand.hbm [shape: bf16[3,3,16,256], index: 1, kind: input, shape index: {}]   ;;  %s2022_s2 = inlined_call_operand.vmem [shape: f32[1,256], index: 2, kind: input, shape index: {}]   ;;  %s2023_s3 = inlined_call_operand.vmem [shape: f32[1,256], index: 3, kind: input, shape index: {}]   ;;  %s2024_s4 = inlined_call_operand.hbm [shape: bf16[2,1,24,256], index: 4, kind: output, shape index: {}]  }
   0x1   :  { %10 = vsyncpa [#allocation5], 0 }
   0x2   :  { %12 = vsyncpa [#allocation5 + $0x1], 0  ;;  %s1786_s15 = smov 0   ;;  %s1788_s16 = smov 0  }
   0x3   :  { %s1790_s17 = smov 0   ;;  %s1792_s18 = smov 0  }
   0x4   :  { %s1794_s19 = smov 0   ;;  %s1796_s20 = smov 0  }
   0x5 LB: > { %s1388_s21 = sadd.s32 4294967295, %s1752_s20   ;;  %s1389_s22 = sadd.s32 4294967294, %s1752_s20   ;;  %s1752_s20 = sphi %s1796_s20, %s18_s20   ;;  %s1748_s19 = sphi %s1794_s19, %s2042_s19   ;;  %s1744_s18 = sphi %s1792_s18, %s2041_s18   ;;  %s1740_s17 = sphi %s1790_s17, %s2040_s17   ;;  %s1736_s16 = sphi %s1788_s16, %s2039_s16   ;;  %s1732_s15 = sphi %s1786_s15, %s2038_s15  }
   0x6   : > { %s30_s23 = sadd.s32 1, %s1748_s19  ;;  %s130_s24 = sadd.s32 1, %s1740_s17 }
   0x7   : > { %p32_p0 = scmp.ge.s32.totalorder %s30_s23, 2  ;;  %p140_p1 = scmp.ne.s32.totalorder %s1740_s17, %s1736_s16 }
   0x8   : > { %p141_p2 = scmp.eq.s32.totalorder %s1388_s21, 1  ;;  %p146_p3 = scmp.ne.s32.totalorder %s1736_s16, %s1732_s15 }
   0x9   : > { %s2044_s23 = smov (%p32_p0, %s30_s23), 0  ;;  %p147_p5 = scmp.eq.s32.totalorder %s1389_s22, 1 }
   0xa   : > { %p1826_p4 = por %p141_p2, %p140_p1  ;;  %s125_s26 = ssub.s32 %s1748_s19, %s2044_s23 }
   0xb   : > { %p1390_p6 = scmp.ge.s32.totalorder %s1752_s20, 1  ;;  %p128_p7 = scmp.eq.s32.totalorder %s125_s26, 0 }
   0xc   : > { %s2029_s25 = scalar_select %p1826_p4, 1, 0 }
   0xd   : > { %p1833_p8 = por %p147_p5, %p146_p3  ;;  %p154_p9 = scmp.lt.s32.totalorder %s1752_s20, 3 }
   0xe   : > { %s1839_s28 = scalar_select %p128_p7, %s1740_s17, %s130_s24  }
   0xf   : > { %s2030_s27 = scalar_select %p1833_p8, 1, 0 }
  0x10   : > { %p1841_p10 = pnand %p1390_p6, %p154_p9  ;;  %p1845_p11 = scmp.eq.s32.totalorder %s1388_s21, 0 }
  0x11   : > { %s1754_s5 = smov [#allocation3]   ;;  %s1642_s10 = scalar_lea.hbm %s2021_s1, 2304 }
  0x12   : > { %s2031_s29 = scalar_select %p1841_p10, 1, 0 }
  0x13   : > { %s2032_s30 = scalar_select %p1845_p11, 1, 0 }
  0x14   : > { %p1532_p12 = pneg %p1841_p10  ;;  %s166_s6 = sshll.u32 %s1754_s5, 4  ;;  %s167_s6 = int_to_ptr.vmem [resolvable:$true] %s166_s6 }
  0x15   : > { %p1643_p0 = scmp.ne.s32.totalorder %s2021_s1, %s1642_s10  ;;  %p1649_p5 = scmp.lt.u32.totalorder %s1642_s10, %s2021_s1 }
  0x16   : > { %p1853_p13 = pnand %p1845_p11, %p1532_p12 }
  0x18   : > { %p1644_p1 = pneg %p1853_p13 }
  0x1a   : > { %p1645_p2 = pnand %p1644_p1, %p1643_p0 }
  0x1c   : > { %p1646_p3 = pneg %p1645_p2 }
  0x1e   : > { %p1651_p6 = pnand %p1649_p5, %p1646_p3 }
  0x20   : > { %1654 = shalt.err (!%p1651_p6)
}
  0x21   : > { %s1655_s21 = scalar_lea.vmem %s167_s6, 2304  ;;  %p1663_p8 = scmp.lt.s32.totalorder %s167_s6, %s167_s6 }
  0x22   : > { %p1656_p7 = scmp.ne.s32.totalorder %s167_s6, %s1655_s21  ;;  %p1664_p4 = scmp.lt.s32.totalorder %s1655_s21, %s1655_s21 }
  0x24   : > { %p1658_p9 = pnand %p1656_p7, %p1644_p1  ;;  %p1665_p11 = por %p1664_p4, %p1663_p8 }
  0x26   : > { %p1659_p12 = pneg %p1658_p9 }
  0x28   : > { %p1666_p10 = pnand %p1665_p11, %p1659_p12 }
  0x2a   : > { %1669 = shalt.err (!%p1666_p10)
}
  0x2b   : > { %s1755_s22 = smov 128   ;;  %s1756_s24 = smov 8  }
  0x2c   : > { %1535 = dma.hbm_to_vmem [thread:$0]  (!%p1853_p13), %s2021_s1, 2304, %s167_s6, [#allocation4], %s1755_s22, %s1755_s22, %s1756_s24  }
  0x2d   : > { %p2034_p0 = scmp.ne.s32.totalorder %s2031_s29, 0 }
  0x2e   : > { %p2035_p2 = scmp.ne.s32.totalorder (!%p2034_p0), %s2032_s30, 0 }
  0x2f   : > { %200 = sbr.rel (%p2034_p0) target bundleno = 377 (0x179), region = 36 }
  0x36   : > { %1723 = dma.done.wait (%p2035_p2), [#allocation4], 2304  }
  0x37   : > { %1725 = vsyncadd (%p2035_p2), [#allocation4], 4294964992  ;;  %p230_p4 = scmp.lt.s32.totalorder %s1744_s18, 1  ;;  %v1757_v0 = vmov 0   ;;  %v1597_v1 = vld [vmem:[#allocation3 + $0x4] ss:$8 sps:$4 sm:$0xff]  }
  0x38   : > { %302 = vmatprep.mubr.bf16.mxu1 %v1757_v0  ;;  %746 = vmatprep.mubr.bf16.mxu0 %v1757_v0  ;;  %v1599_v2 = vld [vmem:[#allocation3] ss:$8 sps:$4 sm:$0xff]   ;;  %v1888_v3 = vld [vmem:[#allocation3 + $0x44] ss:$8 sps:$4 sm:$0xff]   ;;  %vm263_vm0 = vcmask 130048   ;;  %vm468_vm3 = vcmask 1046528  }
  0x39   : > { %s231_s7 = scalar_select %p230_p4, %s1744_s18, 1  ;;  %270 = vmatprep.subr.bf16.mxu1 %v1597_v1  ;;  %v1890_v4 = vld [vmem:[#allocation3 + $0x40] ss:$8 sps:$4 sm:$0xff]   ;;  %714 = vmatprep.subr.bf16.mxu0 %v1888_v3  ;;  %v1604_v6 = vld [vmem:[#allocation3 + $0x10] ss:$8 sps:$4 sm:$0xff]   ;;  %vm899_vm4 = vcmask 1045504  }
  0x3a   : > { %271 = vmatpush1.bf16.msra.mxu1 %v1599_v2  ;;  %v1606_v7 = vld [vmem:[#allocation3 + $0x14] ss:$8 sps:$4 sm:$0xff]   ;;  %715 = vmatpush1.bf16.msra.mxu0 %v1890_v4  ;;  %vm680_vm1 = vsmask.f32 4352  ;;  %v1607_v19 = vld [vmem:[#allocation3 + $0x50] ss:$8 sps:$4 sm:$0xff]  }
  0x3b   : > { %s1524_s8 = smul.u32 24, %s231_s7  ;;  %382 = vmatprep.subr.bf16.mxu1 %v1606_v7  ;;  %v1609_v8 = vld [vmem:[#allocation3 + $0x54] ss:$8 sps:$4 sm:$0xff]   ;;  %v1615_v25 = vld [vmem:[#allocation3 + $0x64] ss:$8 sps:$4 sm:$0xff]   ;;  %vm574_vm5 = vcmask 1044480  }
  0x3c   : > { %813 = vmatprep.subr.bf16.mxu0 %v1609_v8  ;;  %v1621_v29 = vld [vmem:[#allocation3 + $0x24] ss:$8 sps:$4 sm:$0xff]   ;;  %vm350_vm2 = vsmask.f32 7424  ;;  %v1619_v34 = vld [vmem:[#allocation3 + $0x20] ss:$8 sps:$4 sm:$0xff]  }
  0x3d   : > { %s1886_s9 = scalar_lea.vmem %s2020_s0, %s1524_s8  ;;  %v1632_v37 = vld [vmem:[#allocation3 + $0x34] ss:$8 sps:$4 sm:$0xff]   ;;  %v1613_v39 = vld [vmem:[#allocation3 + $0x60] ss:$8 sps:$4 sm:$0xff]   ;;  %v1630_v50 = vld [vmem:[#allocation3 + $0x30] ss:$8 sps:$4 sm:$0xff]  }
  0x3e   : > { %v1603_v5 = vld [vmem:[%s1886_s9] sm:$0xff]   ;;  %v1611_v10 = vld [vmem:[%s1886_s9 + $0x8] sm:$0xff]   ;;  %v1635_v57 = vld [vmem:[#allocation3 + $0x84] ss:$8 sps:$4 sm:$0xff]   ;;  %vm1005_vm6 = vsmask.f32 5376 }
  0x3f   : > { %1400 = vmatmul.mubr.msk.bf16.vlgmr.msra.gmra.mrb[0].mxu1 %vm263_vm0, %v1603_v5  ;;  %v1610_v9 = vld [vmem:[%s1886_s9] sm:$0xf8]   ;;  %v690_v13 = vshrl.u32 %v1611_v10, 16  ;;  %v693_v14 = vshll.u32 %v1611_v10, 16  ;;  %v1612_v15 = vld [vmem:[%s1886_s9 + $0x8] ss:$0 sps:$4 sm:$0xff]  }
  0x40   : > { %383 = vmatpush1.bf16.msra.mxu1 %v1604_v6  ;;  %312 = vmatprep.mubr.bf16.mxu1 %v1757_v0  ;;  %v682_v11 = vshrl.u32 %v1610_v9, 16  ;;  %v685_v12 = vshll.u32 %v1610_v9, 16  ;;  %v1617_v18 = vld [vmem:[%s1886_s9] sm:$0xff]   ;;  %v1618_v23 = vld [vmem:[%s1886_s9 + $0x8] sm:$0x1f]   ;;  %s227_s13 = sand.u32 1, %s1736_s16  }
  0x41   : > { %v692_v20 = vrot.slane %v690_v13, 3  ;;  %v695_v21 = vrot.slane %v693_v14, 4  ;;  %v352_v26 = vshrl.u32 %v1617_v18, 16  ;;  %v354_v27 = vshll.u32 %v1617_v18, 16  ;;  %488 = vmatprep.subr.bf16.mxu1 %v1621_v29  ;;  %v1616_v38 = vld [vmem:[%s1886_s9 + $0x4] sm:$0xff]   ;;  %s1523_s14 = smul.u32 24, %s227_s13 }
  0x42   : > { %v684_v16 = vrot.slane %v682_v11, 3  ;;  %v687_v17 = vrot.slane %v685_v12, 4  ;;  %v359_v28 = vshll.u32 %v1618_v23, 16  ;;  %v363_v36 = vshrl.u32 %v1618_v23, 16  ;;  %v1625_v40 = vld [vmem:[#allocation3 + $0x74] ss:$8 sps:$4 sm:$0xff]  }
  0x43   : > { %v1902_v24 = vor.u32 %v695_v21, %v692_v20  ;;  %v356_v31 = vrot.slane %v354_v27, 1  ;;  %v1628_v42 = vld [vmem:[%s1886_s9] sm:$0xfe]   ;;  %v1629_v43 = vld [vmem:[%s1886_s9 + $0x8] sm:$0x1f]   ;;  %v1215_v21 = vlaneseq  ;;  %s229_s21 = scalar_lea.vmem [#allocation6], %s1523_s14 }
  0x44   : > { %v688_v22 = vor.u32 %v687_v17, %v684_v16  ;;  %v361_v32 = vrot.slane %v359_v28, 1  ;;  %v469_v44 = vrot.slane %v1628_v42, 1  ;;  %v470_v45 = vrot.slane %v1629_v43, 1  ;;  %v1622_v46 = vld [vmem:[%s1886_s9 + $0xc] ss:$0 sps:$4 sm:$0xff]   ;;  %s1525_s22 = smul.u32 384, %s1744_s18 }
  0x45   : > { %v357_v33 = vor.u32 %v356_v31, %v352_v26  ;;  %v1626_v47 = vld [vmem:[%s1886_s9 + $0x4] sm:$0xfc]   ;;  %v1627_v48 = vld [vmem:[%s1886_s9 + $0xc] sm:$0x3f]   ;;  %s1294_s24 = sshll.u32 %s229_s21, 4  ;;  %s1974_s8 = scalar_lea.sflag [#allocation5], %s227_s13  ;;  %s1970_s24 = int_to_ptr.vmem [resolvable:$true] %s1294_s24 }
  0x46   : > { %v697_v30 = vsel %vm680_vm1, %v688_v22, %v1902_v24  ;;  %v365_v41 = vor.u32 %v363_v36, %v361_v32  ;;  %v471_v49 = vsel %vm468_vm3, %v469_v44, %v470_v45  ;;  %v900_v51 = vrot.slane %v1626_v47, 2  ;;  %v1623_v53 = vld [vmem:[#allocation3 + $0x70] ss:$8 sps:$4 sm:$0xff]   ;;  %v1637_v56 = vld [vmem:[%s1886_s9 + $0xc] sm:$0x7f]   ;;  %s1968_s7 = scalar_lea.hbm %s2024_s4, %s1525_s22  ;;  %s1670_s18 = scalar_lea.vmem %s1970_s24, 384 }
  0x47   : > { %1401 = vmatmul.mubr.msk.bf16.gmra.mrb[4].mxu1 %vm263_vm0, %v1612_v15  ;;  %1424 = vmatmul.mubr.msk.bf16.vlgmr.msra.gmra.mrb[0].mxu0 %vm263_vm0, %v697_v30  ;;  %v362_v35 = vsel %vm350_vm2, %v357_v33, %v361_v32  ;;  %v901_v52 = vrot.slane %v1627_v48, 2  ;;  %v1636_v55 = vld [vmem:[%s1886_s9 + $0x4] sm:$0xfc]   ;;  %v1015_v62 = vshrl.u32 %v1637_v56, 16  ;;  %v1018_v63 = vshll.u32 %v1637_v56, 16  ;;  %p1671_p8 = scmp.ne.s32.totalorder %s1970_s24, %s1670_s18  ;;  %p2036_p10 = scmp.ne.s32.totalorder %s2029_s25, 0 }
  0x48   : > { %414 = vmatprep.mubr.bf16.mxu1 %v1757_v0  ;;  %814 = vmatpush1.bf16.msra.mxu0 %v1607_v19  ;;  %v1638_v58 = vld [vmem:[%s1886_s9] sm:$0xf8]   ;;  %v1639_v59 = vld [vmem:[%s1886_s9 + $0x8] sm:$0x7f]   ;;  %v1007_v60 = vshrl.u32 %v1636_v55, 16  ;;  %v1010_v61 = vshll.u32 %v1636_v55, 16 }
  0x49   : > { %845 = vmatprep.mubr.bf16.mxu0 %v1757_v0  ;;  %919 = vmatprep.subr.bf16.mxu0 %v1615_v25  ;;  %v902_v54 = vsel %vm899_vm4, %v900_v51, %v901_v52  ;;  %v575_v1 = vrot.slane %v1638_v58, 3  ;;  %v576_v2 = vrot.slane %v1639_v59, 3  ;;  %v1017_v6 = vrot.slane %v1015_v62, 2  ;;  %v1633_v11 = vld [vmem:[#allocation3 + $0x80] ss:$8 sps:$4 sm:$0xff]   ;;  %p1672_p11 = pnand %p1671_p8, %p2036_p10  ;;  %s1758_s29 = smov [#allocation6]  }
  0x4a   : > { %v1012_v5 = vrot.slane %v1010_v61, 3  ;;  %v1020_v7 = vrot.slane %v1018_v63, 3  ;;  %v1640_v13 = vld [vmem:[%s1886_s9 + $0x4] sm:$0xf8]   ;;  %v1641_v14 = vld [vmem:[%s1886_s9 + $0xc] sm:$0x7f]  }
  0x4b   : > { %v577_v8 = vsel %vm574_vm5, %v575_v1, %v576_v2  ;;  %v1126_v15 = vrot.slane %v1641_v14, 3  ;;  %v1216_v22 = vshrl.u32 %v1215_v21, 7  ;;  %v1213_v25 = vld [vmem:[%s2022_s2] sm:$0x3]  ;;  %p1673_p13 = pneg %p1672_p11  ;;  %s1674_s6 = sshll.u32 %s1758_s29, 4  ;;  %s1675_s6 = int_to_ptr.vmem [resolvable:$false] %s1674_s6 }
  0x4c   : > { %v1021_v10 = vor.u32 %v1020_v7, %v1017_v6  ;;  %s1676_s9 = scalar_lea.vmem %s1675_s6, 768  ;;  %p1677_p1 = scmp.lt.s32.totalorder %s1970_s24, %s1675_s6 }
  0x4d   : > { %v1217_v23 = vsub.s32 0, %v1216_v22  ;;  %v1221_v26 = vsub.s32 1, %v1216_v22  ;;  %p1678_p3 = scmp.lt.s32.totalorder %s1676_s9, %s1670_s18 }
  0x4f   : > { %1406 = vmatmul.mubr.msk.bf16.vlgmr.msra.gmra.mrb[0].mxu1 %vm263_vm0, %v362_v35  ;;  %v1218_v27 = vrot.slane %v1213_v25, %v1217_v23  ;;  %v1222_v30 = vrot.slane %v1213_v25, %v1221_v26  ;;  %p1679_p5 = por %p1678_p3, %p1677_p1 }
  0x50   : > { %489 = vmatpush1.bf16.msra.mxu1 %v1619_v34  ;;  %424 = vmatprep.mubr.bf16.mxu1 %v1757_v0 }
  0x51   : > { %594 = vmatprep.subr.bf16.mxu1 %v1632_v37  ;;  %p1680_p6 = pnand %p1679_p5, %p1673_p13 }
  0x53   : > { %1430 = vmatmul.mubr.msk.bf16.vlgmr.msra.gmra.mrb[0].mxu0 %vm263_vm0, %v1616_v38 }
  0x54   : > { %920 = vmatpush1.bf16.msra.mxu0 %v1613_v39  ;;  %855 = vmatprep.mubr.bf16.mxu0 %v1757_v0 }
  0x55   : > { %1039 = vmatprep.subr.bf16.mxu0 %v1625_v40 }
  0x57   : > { %1407 = vmatmul.mubr.msk.bf16.gmra.mrb[4].mxu1 %vm263_vm0, %v365_v41 }
  0x58   : > { %520 = vmatprep.mubr.bf16.mxu1 %v1757_v0 }
  0x5b   : > { %1431 = vmatmul.mubr.msk.bf16.gmra.mrb[4].mxu0 %vm263_vm0, %v1622_v46 }
  0x5c   : > { %951 = vmatprep.mubr.bf16.mxu0 %v1757_v0 }
  0x5f   : > { %1412 = vmatmul.mubr.msk.bf16.vlgmr.msra.gmra.mrb[0].mxu1 %vm263_vm0, %v471_v49 }
  0x60   : > { %595 = vmatpush1.bf16.msra.mxu1 %v1630_v50  ;;  %530 = vmatprep.mubr.bf16.mxu1 %v1757_v0 }
  0x61   : > { %1459 = vmatprep.subr.bf16.mxu1 %v1888_v3  ;;  %v1009_v3 = vrot.slane %v1007_v60, 2 }
  0x63   : > { %1436 = vmatmul.mubr.msk.bf16.vlgmr.msra.gmra.mrb[0].mxu0 %vm263_vm0, %v902_v54  ;;  %v1013_v9 = vor.u32 %v1012_v5, %v1009_v3 }
  0x64   : > { %1040 = vmatpush1.bf16.msra.mxu0 %v1623_v53  ;;  %961 = vmatprep.mubr.bf16.mxu0 %v1757_v0 }
  0x65   : > { %1144 = vmatprep.subr.bf16.mxu0 %v1635_v57  ;;  %v1022_v12 = vsel %vm1005_vm6, %v1013_v9, %v1021_v10 }
  0x67   : > { %1413 = vmatmul.mubr.msk.bf16.gmra.mrb[4].mxu1 %vm263_vm0, %v470_v45 }
  0x68   : > { %626 = vmatprep.mubr.bf16.mxu1 %v1757_v0 }
  0x6b   : > { %1437 = vmatmul.mubr.msk.bf16.gmra.mrb[4].mxu0 %vm263_vm0, %v901_v52 }
  0x6c   : > { %1071 = vmatprep.mubr.bf16.mxu0 %v1757_v0 }
  0x6f   : > { %1418 = vmatmul.mubr.msk.bf16.vlgmr.msra.gmra.mrb[0].mxu1 %vm263_vm0, %v577_v8 }
  0x70   : > { %1460 = vmatpush1.bf16.msra.mxu1 %v1890_v4  ;;  %636 = vmatprep.mubr.bf16.mxu1 %v1757_v0  ;;  %v1125_v4 = vrot.slane %v1640_v13, 3 }
  0x72   : > { %v1127_v16 = vsel %vm574_vm5, %v1125_v4, %v1126_v15 }
  0x73   : > { %1442 = vmatmul.mubr.msk.bf16.vlgmr.msra.gmra.mrb[0].mxu0 %vm263_vm0, %v1022_v12 }
  0x74   : > { %1145 = vmatpush1.bf16.msra.mxu0 %v1633_v11  ;;  %1081 = vmatprep.mubr.bf16.mxu0 %v1757_v0 }
  0x77   : > { %1419 = vmatmul.mubr.msk.bf16.gmra.mrb[4].mxu1 %vm263_vm0, %v576_v2 }
  0x78   : > { %756 = vmatprep.mubr.bf16.mxu1 %v1757_v0 }
  0x7b   : > { %1443 = vmatmul.mubr.msk.bf16.gmra.mrb[4].mxu0 %vm263_vm0, %v1021_v10 }
  0x7c   : > { %1176 = vmatprep.mubr.bf16.mxu0 %v1757_v0 }
  0x83   : > { %1425 = vmatmul.mubr.msk.bf16.vlgmr.msra.gmra.mrb[4].mxu1 %vm263_vm0, %v1902_v24  ;;  %1448 = vmatmul.mubr.msk.bf16.vlgmr.msra.gmra.mrb[0].mxu0 %vm263_vm0, %v1127_v16  ;;  %v1231_v24 = vld [vmem:[%s2023_s3] sm:$0x3] }
  0x84   : > { %1186 = vmatprep.mubr.bf16.mxu0 %v1757_v0  ;;  %v1236_v33 = vrot.slane %v1231_v24, %v1217_v23  ;;  %v1240_v37 = vrot.slane %v1231_v24, %v1221_v26 }
  0x8b   : > { %1449 = vmatmul.mubr.msk.bf16.gmra.mrb[4].mxu0 %vm263_vm0, %v1126_v15 }
 0x142   : > { %v628_v17 = vpop.f32.mrb[0].mxu1 }
 0x143   : > { %v630_v18 = vpop.f32.mrb[1].mxu1 }
 0x144   : > { %v632_v19 = vpop.f32.mrb[2].mxu1 }
 0x145   : > { %v634_v20 = vpop.f32.mrb[3].mxu1 }
 0x156   : > { %v758_v0 = vpop.f32.mrb[4].mxu1  ;;  %v1178_v29 = vpop.f32.mrb[0].mxu0 }
 0x157   : > { %v760_v28 = vpop.f32.mrb[5].mxu1  ;;  %v1461_v32 = vadd.f32 %v1178_v29, %v628_v17  ;;  %v1180_v34 = vpop.f32.mrb[1].mxu0 }
 0x158   : > { %v762_v31 = vpop.f32.mrb[6].mxu1  ;;  %v1462_v36 = vadd.f32 %v1180_v34, %v630_v18  ;;  %v1182_v38 = vpop.f32.mrb[2].mxu0 }
 0x159   : > { %v763_v35 = vpop.f32.mrb[7].mxu1  ;;  %v1225_v39 = vmul.f32 %v1461_v32, %v1218_v27  ;;  %v1463_v40 = vadd.f32 %v1182_v38, %v632_v19  ;;  %v1184_v41 = vpop.f32.mrb[3].mxu0 }
 0x15a   : > { %v1226_v42 = vmul.f32 %v1462_v36, %v1222_v30  ;;  %v1464_v43 = vadd.f32 %v1184_v41, %v634_v20 }
 0x15b   : > { %v1243_v44 = vadd.f32 %v1236_v33, %v1225_v39  ;;  %v1227_v45 = vmul.f32 %v1463_v40, %v1218_v27 }
 0x15c   : > { %v1244_v46 = vadd.f32 %v1240_v37, %v1226_v42  ;;  %v1228_v47 = vmul.f32 %v1464_v43, %v1222_v30 }
 0x15d   : > { %v1249_v48 = vmax.f32 %v1243_v44, 0.0  ;;  %v1245_v49 = vadd.f32 %v1236_v33, %v1227_v45 }
 0x15e   : > { %v1250_v50 = vmax.f32 %v1244_v46, 0.0  ;;  %v1246_v51 = vadd.f32 %v1240_v37, %v1228_v47  ;;  %v1188_v52 = vpop.f32.mrb[4].mxu0 }
 0x15f   : > { %v1251_v53 = vmax.f32 %v1245_v49, 0.0  ;;  %v1465_v54 = vadd.f32 %v1188_v52, %v758_v0  ;;  %v1190_v55 = vpop.f32.mrb[5].mxu0 }
 0x160   : > { %v1456_v56 = vpack.c.bf16 %v1250_v50, %v1249_v48  ;;  %v1252_v57 = vmax.f32 %v1246_v51, 0.0  ;;  %v1466_v58 = vadd.f32 %v1190_v55, %v760_v28  ;;  %v1192_v59 = vpop.f32.mrb[6].mxu0 }
 0x161   : > { %v1229_v60 = vmul.f32 %v1465_v54, %v1218_v27  ;;  %v1193_v61 = vpop.f32.mrb[7].mxu0 }
 0x162   : > { %1275 = vst [vmem:[%s229_s21] sm:$0xff] %v1456_v56  ;;  %v1457_v62 = vpack.c.bf16 %v1252_v57, %v1251_v53  ;;  %v1230_v63 = vmul.f32 %v1466_v58, %v1222_v30 }
 0x163   : > { %v1247_v1 = vadd.f32 %v1236_v33, %v1229_v60 }
 0x164   : > { %1276 = vst [vmem:[%s229_s21 + $0x8] sm:$0xff] %v1457_v62  ;;  %v1248_v2 = vadd.f32 %v1240_v37, %v1230_v63 }
 0x165   : > { %v1253_v3 = vmax.f32 %v1247_v1, 0.0 }
 0x166   : > { %v1254_v5 = vmax.f32 %v1248_v2, 0.0 }
 0x168   : > { %v1458_v6 = vpack.c.bf16 %v1254_v5, %v1253_v3 }
 0x16a   : > { %1277 = vst [vmem:[%s229_s21 + $0x10] sm:$0xff] %v1458_v6 }
 0x16b   : > { %1683 = shalt.err (!%p1680_p6)
}
 0x16c   : > { %s1684_s30 = scalar_lea.hbm %s1968_s7, 384  ;;  %s1688_s12 = scalar_lea.hbm %s2024_s4, 768 }
 0x16d   : > { %p1685_p7 = scmp.ne.s32.totalorder %s1968_s7, %s1684_s30  ;;  %p1689_p0 = scmp.lt.u32.totalorder %s1968_s7, %s2024_s4 }
 0x16e   : > { %p1690_p2 = scmp.lt.u32.totalorder %s1688_s12, %s1684_s30  ;;  %p1692_p8 = scmp.lt.u32.totalorder %s1684_s30, %s1968_s7 }
 0x16f   : > { %p1686_p9 = pnand %p1685_p7, %p2036_p10 }
 0x170   : > { %p1691_p4 = por %p1690_p2, %p1689_p0 }
 0x171   : > { %p1687_p12 = pneg %p1686_p9 }
 0x172   : > { %p1693_p11 = por %p1692_p8, %p1691_p4 }
 0x174   : > { %p1694_p13 = pnand %p1693_p11, %p1687_p12 }
 0x176   : > { %1697 = shalt.err (!%p1694_p13)
}
 0x177   : > { %s1759_s21 = smov 128   ;;  %s1760_s22 = smov 8  }
 0x178   : > { %1530 = dma.vmem_to_hbm [thread:$0]  (%p2036_p10), %s1970_s24, 384, %s1968_s7, %s1974_s8, %s1759_s21, %s1759_s21, %s1760_s22  }
 0x179 PF: > { %p1542_p1 = scmp.ge.s32.totalorder %s1752_s20, 2  ;;  %s1309_s26 = sand.u32 1, %s1732_s15  }
 0x17a   : > { %p2037_p3 = scmp.ne.s32.totalorder %s2030_s27, 0  ;;  %s1310_s5 = scalar_lea.sflag [#allocation5], %s1309_s26 }
 0x17c   : > { %p1537_p5 = pnand %p1542_p1, %p2037_p3 }
 0x17e   : > { %1727 = dma.done.wait (!%p1537_p5), %s1310_s5, 384  }
 0x17f   : > { %1729 = vsyncadd (!%p1537_p5), %s1310_s5, 4294966912  ;;  %s18_s20 = sadd.s32 1, %s1752_s20   ;;  %s2038_s15 = smov %s1736_s16 }
 0x180   : > { %p15_p6 = scmp.ge.s32.totalorder %s18_s20, 4   ;;  %s2039_s16 = smov %s1740_s17 }
 0x181   : > { %s2040_s17 = smov %s1839_s28  ;;  %s2041_s18 = smov %s1748_s19 }
 0x182   : > { %s2042_s19 = smov %s2044_s23  ;;  %17 = sbr.rel (!%p15_p6) target bundleno = 5 (0x5), region = 84 }
 0x189   :  { %1315 = vsyncpa [#allocation4], 1 }
 0x18a   :  { %1317 = vsyncpa [#allocation4 + $0x1], 1 }
 0x18b   :  { %1318 = vsyncpa [#allocation5], 1 }
 0x18c   :  { %1320 = vsyncpa [#allocation5 + $0x1], 1 }

</bundles_post_ra>
